<compile_context>
chip_gen: v7x
topology: tpu7x:2x2x1
jax: 0.10.0
libtpu: 0.0.40
codegen_flags: <defaults>
</compile_context>

<pallas_src>
import functools

import jax
import jax.numpy as jnp
from jax import lax
from jax.experimental import pallas as pl
from jax.experimental.pallas import tpu as pltpu

NEG_SLOPE = 0.01      # nn.LeakyReLU default negative_slope
BN_EPS = 1e-5         # PyTorch BatchNorm default eps
LANE = 128
SUBLANE_BF16 = 16     # bf16 sublane packing: tiles are (16, 128)
PATCH_BUF_BYTES = 12 * 1024 * 1024   # per-pipeline-buffer budget for the patch block
VMEM_LIMIT_BYTES = 48 * 1024 * 1024


def _cdiv(a, b):
    return -(-a // b)


def _rup(n, m):
    return _cdiv(n, m) * m


def _leaky_relu(x):
    return jnp.where(x >= 0, x, NEG_SLOPE * x)


def lbp_kernel(patches_ref, wc_ref, t0_ref,
               w1_ref, t1_ref,
               w2_ref, t2_ref,
               w3_ref, b3_ref, out_ref):
    """Fused forward pass for one row tile of the patch matrix.

    BN scales are pre-folded into the weight columns; only shifts remain.
    Matmuls: bf16 operands, f32 accumulation. Epilogues in f32.
    Only the first NC (= out_ref.shape[1]) lanes of the final layer are stored.
    """
    # Conv2d as matmul (+ folded BatchNorm2d shift) + LeakyReLU
    h = jnp.dot(patches_ref[...], wc_ref[...], preferred_element_type=jnp.float32)
    h = _leaky_relu(h + t0_ref[...])
    # fc1 (+ folded BatchNorm1d shift) + LeakyReLU
    h = jnp.dot(h.astype(jnp.bfloat16), w1_ref[...],
                preferred_element_type=jnp.float32)
    h = _leaky_relu(h + t1_ref[...])
    # fc2 (+ folded BatchNorm1d shift) + LeakyReLU
    h = jnp.dot(h.astype(jnp.bfloat16), w2_ref[...],
                preferred_element_type=jnp.float32)
    h = _leaky_relu(h + t2_ref[...])
    # fc3 + sigmoid (bn3 exists in the PyTorch module but is unused in forward)
    h = jnp.dot(h.astype(jnp.bfloat16), w3_ref[...],
                preferred_element_type=jnp.float32)
    h = jax.nn.sigmoid(h + b3_ref[...])
    nc = out_ref.shape[1]
    out_ref[...] = h[:, :nc]            # NC-wide store; padded lanes never hit HBM


def _fold_bn(gamma, beta, mean, var, lin_bias):
    """Fold a linear-layer bias + eval-mode BatchNorm into (scale, shift)."""
    scale = gamma / jnp.sqrt(var + BN_EPS)
    shift = beta + scale * (lin_bias - mean)
    return scale, shift


def _im2col(x, K, S):
    """x: (B, C, H, W) -> patches (B*OH*OW, C*K*K), feature order (c, kh, kw).

    Channel-last output spec so the result is already contiguous row-major in
    (b, oh, ow) x (c, kh, kw) — no transpose copy is needed.
    """
    B, C, H, W = x.shape
    OH = (H - K) // S + 1
    OW = (W - K) // S + 1
    patches = lax.conv_general_dilated_patches(
        x, filter_shape=(K, K), window_strides=(S, S), padding="VALID",
        dimension_numbers=("NCHW", "OIHW", "NHWC"))
    return patches.reshape(B * OH * OW, C * K * K), OH * OW


def _pad2(a, rows, cols):
    return jnp.pad(a, ((0, rows - a.shape[0]), (0, cols - a.shape[1])))


def _pad_row(v, cols):
    v = v.reshape(1, -1).astype(jnp.float32)
    return jnp.pad(v, ((0, 0), (0, cols - v.shape[1])))


def _choose_row_tiling(R, CKKp, row_tile):
    """Pick (rt, n_tiles): rt multiple of 16, tiles evened out, >=2 (even) tiles
    when there is enough work (v7x megacore), patch buffer <= PATCH_BUF_BYTES."""
    rt_vmem_cap = max(SUBLANE_BF16,
                      (PATCH_BUF_BYTES // (CKKp * 2)) // SUBLANE_BF16 * SUBLANE_BF16)
    row_tile_eff = max(SUBLANE_BF16, min(row_tile, rt_vmem_cap))
    n_tiles = _cdiv(R, row_tile_eff)
    if R > SUBLANE_BF16:
        n_tiles = max(n_tiles, 2)          # let both v7x TCs get work
    if n_tiles > 1 and n_tiles % 2:
        n_tiles += 1                       # even tile count balances the 2 TCs
    rt = _rup(_cdiv(R, n_tiles), SUBLANE_BF16)
    return rt, n_tiles


@functools.partial(jax.jit, static_argnames=("kernel_size", "stride", "row_tile"))
def lbp_forward(x, params, *, kernel_size, stride, row_tile=1024):
    B = x.shape[0]
    # Extract patches directly in bf16: single bf16 materialization in HBM.
    patches, N = _im2col(x.astype(jnp.bfloat16), kernel_size, stride)
    R, CKK = patches.shape

    # Fold BatchNorms (eval mode): scale goes into the weight columns
    # (one-time parameter transform), shift stays as a per-channel add.
    s0, t0 = _fold_bn(params["bn0_g"], params["bn0_b"], params["bn0_m"],
                      params["bn0_v"], params["bc"])
    s1, t1 = _fold_bn(params["bn1_g"], params["bn1_b"], params["bn1_m"],
                      params["bn1_v"], params["b1"])
    s2, t2 = _fold_bn(params["bn2_g"], params["bn2_b"], params["bn2_m"],
                      params["bn2_v"], params["b2"])
    wc = params["wc"] * s0[None, :]
    w1 = params["w1"] * s1[None, :]
    w2 = params["w2"] * s2[None, :]
    w3, b3 = params["w3"], params["b3"]

    F, M1, M2, NC = wc.shape[1], w1.shape[1], w2.shape[1], w3.shape[1]
    CKKp, Fp, M1p, M2p, NCp = (_rup(CKK, LANE), _rup(F, LANE), _rup(M1, LANE),
                               _rup(M2, LANE), _rup(NC, LANE))

    # Lane-pad narrow layers (zero rows/cols are exact no-ops) and cast the
    # matmul operands to bf16 (f32 accumulation happens inside the kernel).
    wc_p = _pad2(wc, CKKp, Fp).astype(jnp.bfloat16)
    w1_p = _pad2(w1, Fp, M1p).astype(jnp.bfloat16)
    w2_p = _pad2(w2, M1p, M2p).astype(jnp.bfloat16)
    w3_p = _pad2(w3, M2p, NCp).astype(jnp.bfloat16)
    t0_p = _pad_row(t0, Fp)
    t1_p = _pad_row(t1, M1p)
    t2_p = _pad_row(t2, M2p)
    b3_p = _pad_row(b3, NCp)

    rt, n_tiles = _choose_row_tiling(R, CKKp, row_tile)
    R_pad = rt * n_tiles
    # Single pad of the already-bf16 patch matrix (no second materialization).
    patches_p = jnp.pad(patches, ((0, R_pad - R), (0, CKKp - CKK)))

    full = lambda shp: pl.BlockSpec(shp, lambda i: (0, 0))

    out = pl.pallas_call(
        lbp_kernel,
        out_shape=jax.ShapeDtypeStruct((R_pad, NC), jnp.float32),
        grid_spec=pltpu.PrefetchScalarGridSpec(
            num_scalar_prefetch=0,
            grid=(n_tiles,),
            in_specs=[
                pl.BlockSpec((rt, CKKp), lambda i: (i, 0)),   # patches (row tile)
                full((CKKp, Fp)), full((1, Fp)),              # conv weight / bn0 shift
                full((Fp, M1p)), full((1, M1p)),              # fc1 / bn1 shift
                full((M1p, M2p)), full((1, M2p)),             # fc2 / bn2 shift
                full((M2p, NCp)), full((1, NCp)),             # fc3 / bias
            ],
            # Last dim == full array dim (NC): narrow masked store, no padded
            # f32 slab and no post-kernel lane slice.
            out_specs=pl.BlockSpec((rt, NC), lambda i: (i, 0)),
        ),
        compiler_params=pltpu.CompilerParams(
            dimension_semantics=("parallel",),
            vmem_limit_bytes=VMEM_LIMIT_BYTES),
    )(patches_p, wc_p, t0_p, w1_p, t1_p, w2_p, t2_p, w3_p, b3_p)

    return out[:R].reshape(B, N, NC)


def lbp_forward_ref(x, params, *, kernel_size, stride):
    """Pure-JAX f32 reference (same math, no Pallas, no bf16)."""
    B = x.shape[0]
    patches, N = _im2col(x, kernel_size, stride)
    s0, t0 = _fold_bn(params["bn0_g"], params["bn0_b"], params["bn0_m"],
                      params["bn0_v"], params["bc"])
    s1, t1 = _fold_bn(params["bn1_g"], params["bn1_b"], params["bn1_m"],
                      params["bn1_v"], params["b1"])
    s2, t2 = _fold_bn(params["bn2_g"], params["bn2_b"], params["bn2_m"],
                      params["bn2_v"], params["b2"])
    h = _leaky_relu(patches @ params["wc"] * s0 + t0)
    h = _leaky_relu(h @ params["w1"] * s1 + t1)
    h = _leaky_relu(h @ params["w2"] * s2 + t2)
    h = jax.nn.sigmoid(h @ params["w3"] + params["b3"])
    return h.reshape(B, N, -1)


def init_params(key, C, K, F, M1, M2, NC):
    """Deterministic synthetic parameters (shapes follow the PyTorch module)."""
    ks = jax.random.split(key, 8)
    nrm = lambda k, shp, s: (s * jax.random.normal(k, shp)).astype(jnp.float32)
    CKK = C * K * K
    return {
        # Conv2d(C, F, K, stride) as (C*K*K, F) matmul weight + bias
        "wc": nrm(ks[0], (CKK, F), 0.02), "bc": nrm(ks[1], (F,), 0.02),
        # BatchNorm2d(F) running stats / affine
        "bn0_g": 1.0 + nrm(ks[2], (F,), 0.05), "bn0_b": nrm(ks[2], (F,), 0.05),
        "bn0_m": nrm(ks[3], (F,), 0.05),
        "bn0_v": 1.0 + 0.1 * jnp.abs(nrm(ks[3], (F,), 1.0)),
        # mlp_3layer: fc1 (F -> M1), bn1, fc2 (M1 -> M2), bn2, fc3 (M2 -> NC)
        "w1": nrm(ks[4], (F, M1), 0.05), "b1": nrm(ks[4], (M1,), 0.05),
        "bn1_g": jnp.ones((M1,), jnp.float32), "bn1_b": jnp.zeros((M1,), jnp.float32),
        "bn1_m": jnp.zeros((M1,), jnp.float32), "bn1_v": jnp.ones((M1,), jnp.float32),
        "w2": nrm(ks[5], (M1, M2), 0.05), "b2": nrm(ks[5], (M2,), 0.05),
        "bn2_g": jnp.ones((M2,), jnp.float32), "bn2_b": jnp.zeros((M2,), jnp.float32),
        "bn2_m": jnp.zeros((M2,), jnp.float32), "bn2_v": jnp.ones((M2,), jnp.float32),
        "w3": nrm(ks[6], (M2, NC), 0.1), "b3": nrm(ks[7], (NC,), 0.1),
    }


if __name__ == "__main__":
    # Small shapes consistent with the module: LBPModel(in_channels=3,
    # num_classes=2) with a scaled-down feature extractor:
    # Conv2d(3, 256, kernel_size=16, stride=8); mlp_3layer(256, 2) ->
    # mid_channels=64, last_channels=16.
    B, C, H, W = 2, 3, 32, 32
    K, S = 16, 8
    F, NC = 256, 2
    M1, M2 = F // 4, F // 16

    key = jax.random.PRNGKey(0)
    kx, kp = jax.random.split(key)
    x = jax.random.normal(kx, (B, C, H, W), jnp.float32)      # NCHW, like PyTorch
    params = init_params(kp, C, K, F, M1, M2, NC)

    out = lbp_forward(x, params, kernel_size=K, stride=S)
    out = jax.block_until_ready(out)

    ref = lbp_forward_ref(x, params, kernel_size=K, stride=S)
    assert out.shape == (B, ((H - K) // S + 1) ** 2, NC), out.shape
    assert jnp.allclose(out, ref, atol=1e-2, rtol=1e-2), \
        float(jnp.max(jnp.abs(out - ref)))

    print("KERNEL_OK")
</pallas_src>

<mosaic_0001>
module attributes {stable_mosaic.version = 11 : i64} {
  func.func @lbp_kernel(%arg0: i32, %arg1: memref<16x768xbf16, #tpu.memory_space<vmem>>, %arg2: memref<768x256xbf16, #tpu.memory_space<vmem>>, %arg3: memref<1x256xf32, #tpu.memory_space<vmem>>, %arg4: memref<256x128xbf16, #tpu.memory_space<vmem>>, %arg5: memref<1x128xf32, #tpu.memory_space<vmem>>, %arg6: memref<128x128xbf16, #tpu.memory_space<vmem>>, %arg7: memref<1x128xf32, #tpu.memory_space<vmem>>, %arg8: memref<128x128xbf16, #tpu.memory_space<vmem>>, %arg9: memref<1x128xf32, #tpu.memory_space<vmem>>, %arg10: memref<16x2xf32, #tpu.memory_space<vmem>>) attributes {dimension_semantics = [#tpu.dimension_semantics<parallel>], iteration_bounds = array<i64: 2>, scalar_prefetch = 0 : i64, scratch_operands = 0 : i64, tpu.core_type = #tpu.core_type<tc>, window_params = [{transform_indices = @transform_0, window_bounds = array<i64: 16, 768>}, {pipeline_mode = #tpu.pipeline_mode<synchronous>, transform_indices = @transform_1, window_bounds = array<i64: 768, 256>}, {pipeline_mode = #tpu.pipeline_mode<synchronous>, transform_indices = @transform_2, window_bounds = array<i64: 1, 256>}, {pipeline_mode = #tpu.pipeline_mode<synchronous>, transform_indices = @transform_3, window_bounds = array<i64: 256, 128>}, {pipeline_mode = #tpu.pipeline_mode<synchronous>, transform_indices = @transform_4, window_bounds = array<i64: 1, 128>}, {pipeline_mode = #tpu.pipeline_mode<synchronous>, transform_indices = @transform_5, window_bounds = array<i64: 128, 128>}, {pipeline_mode = #tpu.pipeline_mode<synchronous>, transform_indices = @transform_6, window_bounds = array<i64: 1, 128>}, {pipeline_mode = #tpu.pipeline_mode<synchronous>, transform_indices = @transform_7, window_bounds = array<i64: 128, 128>}, {pipeline_mode = #tpu.pipeline_mode<synchronous>, transform_indices = @transform_8, window_bounds = array<i64: 1, 128>}, {transform_indices = @transform_9, window_bounds = array<i64: 16, 2>}]} {
    %c0 = arith.constant 0 : index
    %c0_0 = arith.constant 0 : index
    %0 = vector.load %arg1[%c0, %c0_0] : memref<16x768xbf16, #tpu.memory_space<vmem>>, vector<16x768xbf16>
    %c0_1 = arith.constant 0 : index
    %c0_2 = arith.constant 0 : index
    %1 = vector.load %arg2[%c0_1, %c0_2] : memref<768x256xbf16, #tpu.memory_space<vmem>>, vector<768x256xbf16>
    %cst = arith.constant dense<0.000000e+00> : vector<16x256xf32>
    %2 = tpu.matmul %0, %1, %cst {dimension_numbers = #tpu.dot_dimension_numbers<[1], [0], [0], [1], [0, 0, 1, 1], [], []>} : vector<16x768xbf16>, vector<768x256xbf16>, vector<16x256xf32> -> vector<16x256xf32>
    %c0_3 = arith.constant 0 : index
    %c0_4 = arith.constant 0 : index
    %3 = vector.load %arg3[%c0_3, %c0_4] : memref<1x256xf32, #tpu.memory_space<vmem>>, vector<1x256xf32>
    %4 = vector.broadcast %3 : vector<1x256xf32> to vector<16x256xf32>
    %5 = arith.addf %2, %4 : vector<16x256xf32>
    %cst_5 = arith.constant 0.000000e+00 : f32
    %6 = vector.broadcast %cst_5 : f32 to vector<16x256xf32>
    %7 = arith.cmpf oge, %5, %6 : vector<16x256xf32>
    %cst_6 = arith.constant 0.00999999977 : f32
    %8 = vector.broadcast %cst_6 : f32 to vector<16x256xf32>
    %9 = arith.mulf %8, %5 : vector<16x256xf32>
    %10 = arith.select %7, %5, %9 : vector<16x256xi1>, vector<16x256xf32>
    %11 = arith.truncf %10 : vector<16x256xf32> to vector<16x256xbf16>
    %c0_7 = arith.constant 0 : index
    %c0_8 = arith.constant 0 : index
    %12 = vector.load %arg4[%c0_7, %c0_8] : memref<256x128xbf16, #tpu.memory_space<vmem>>, vector<256x128xbf16>
    %cst_9 = arith.constant dense<0.000000e+00> : vector<16x128xf32>
    %13 = tpu.matmul %11, %12, %cst_9 {dimension_numbers = #tpu.dot_dimension_numbers<[1], [0], [0], [1], [0, 0, 1, 1], [], []>} : vector<16x256xbf16>, vector<256x128xbf16>, vector<16x128xf32> -> vector<16x128xf32>
    %c0_10 = arith.constant 0 : index
    %c0_11 = arith.constant 0 : index
    %14 = vector.load %arg5[%c0_10, %c0_11] : memref<1x128xf32, #tpu.memory_space<vmem>>, vector<1x128xf32>
    %15 = vector.broadcast %14 : vector<1x128xf32> to vector<16x128xf32>
    %16 = arith.addf %13, %15 : vector<16x128xf32>
    %cst_12 = arith.constant 0.000000e+00 : f32
    %17 = vector.broadcast %cst_12 : f32 to vector<16x128xf32>
    %18 = arith.cmpf oge, %16, %17 : vector<16x128xf32>
    %cst_13 = arith.constant 0.00999999977 : f32
    %19 = vector.broadcast %cst_13 : f32 to vector<16x128xf32>
    %20 = arith.mulf %19, %16 : vector<16x128xf32>
    %21 = arith.select %18, %16, %20 : vector<16x128xi1>, vector<16x128xf32>
    %22 = arith.truncf %21 : vector<16x128xf32> to vector<16x128xbf16>
    %c0_14 = arith.constant 0 : index
    %c0_15 = arith.constant 0 : index
    %23 = vector.load %arg6[%c0_14, %c0_15] : memref<128x128xbf16, #tpu.memory_space<vmem>>, vector<128x128xbf16>
    %cst_16 = arith.constant dense<0.000000e+00> : vector<16x128xf32>
    %24 = tpu.matmul %22, %23, %cst_16 {dimension_numbers = #tpu.dot_dimension_numbers<[1], [0], [0], [1], [0, 0, 1, 1], [], []>} : vector<16x128xbf16>, vector<128x128xbf16>, vector<16x128xf32> -> vector<16x128xf32>
    %c0_17 = arith.constant 0 : index
    %c0_18 = arith.constant 0 : index
    %25 = vector.load %arg7[%c0_17, %c0_18] : memref<1x128xf32, #tpu.memory_space<vmem>>, vector<1x128xf32>
    %26 = vector.broadcast %25 : vector<1x128xf32> to vector<16x128xf32>
    %27 = arith.addf %24, %26 : vector<16x128xf32>
    %cst_19 = arith.constant 0.000000e+00 : f32
    %28 = vector.broadcast %cst_19 : f32 to vector<16x128xf32>
    %29 = arith.cmpf oge, %27, %28 : vector<16x128xf32>
    %cst_20 = arith.constant 0.00999999977 : f32
    %30 = vector.broadcast %cst_20 : f32 to vector<16x128xf32>
    %31 = arith.mulf %30, %27 : vector<16x128xf32>
    %32 = arith.select %29, %27, %31 : vector<16x128xi1>, vector<16x128xf32>
    %33 = arith.truncf %32 : vector<16x128xf32> to vector<16x128xbf16>
    %c0_21 = arith.constant 0 : index
    %c0_22 = arith.constant 0 : index
    %34 = vector.load %arg8[%c0_21, %c0_22] : memref<128x128xbf16, #tpu.memory_space<vmem>>, vector<128x128xbf16>
    %cst_23 = arith.constant dense<0.000000e+00> : vector<16x128xf32>
    %35 = tpu.matmul %33, %34, %cst_23 {dimension_numbers = #tpu.dot_dimension_numbers<[1], [0], [0], [1], [0, 0, 1, 1], [], []>} : vector<16x128xbf16>, vector<128x128xbf16>, vector<16x128xf32> -> vector<16x128xf32>
    %c0_24 = arith.constant 0 : index
    %c0_25 = arith.constant 0 : index
    %36 = vector.load %arg9[%c0_24, %c0_25] : memref<1x128xf32, #tpu.memory_space<vmem>>, vector<1x128xf32>
    %37 = vector.broadcast %36 : vector<1x128xf32> to vector<16x128xf32>
    %38 = arith.addf %35, %37 : vector<16x128xf32>
    %39 = arith.negf %38 : vector<16x128xf32>
    %40 = math.exp %39 : vector<16x128xf32>
    %cst_26 = arith.constant 1.000000e+00 : f32
    %41 = vector.broadcast %cst_26 : f32 to vector<16x128xf32>
    %42 = arith.addf %41, %40 : vector<16x128xf32>
    %43 = arith.divf %41, %42 : vector<16x128xf32>
    %44 = vector.extract_strided_slice %43 {offsets = [0, 0], sizes = [16, 2], strides = [1, 1]} : vector<16x128xf32> to vector<16x2xf32>
    %c0_27 = arith.constant 0 : index
    %c0_28 = arith.constant 0 : index
    %45 = vector.load %arg10[%c0_27, %c0_28] : memref<16x2xf32, #tpu.memory_space<vmem>>, vector<16x2xf32>
    tpu.vector_store %arg10[%c0_27, %c0_28], %44 {strides = array<i32>} : memref<16x2xf32, #tpu.memory_space<vmem>>, vector<16x2xf32>,
    return
  }
  func.func @transform_0(%arg0: i32) -> (i32, i32) {
    %c0_i32 = arith.constant 0 : i32
    %c0_i32_0 = arith.constant 0 : i32
    return %arg0, %c0_i32 : i32, i32
  }
  func.func @transform_1(%arg0: i32) -> (i32, i32) {
    %c0_i32 = arith.constant 0 : i32
    %c0_i32_0 = arith.constant 0 : i32
    %c0_i32_1 = arith.constant 0 : i32
    return %c0_i32, %c0_i32_0 : i32, i32
  }
  func.func @transform_2(%arg0: i32) -> (i32, i32) {
    %c0_i32 = arith.constant 0 : i32
    %c0_i32_0 = arith.constant 0 : i32
    %c0_i32_1 = arith.constant 0 : i32
    return %c0_i32, %c0_i32_0 : i32, i32
  }
  func.func @transform_3(%arg0: i32) -> (i32, i32) {
    %c0_i32 = arith.constant 0 : i32
    %c0_i32_0 = arith.constant 0 : i32
    %c0_i32_1 = arith.constant 0 : i32
    return %c0_i32, %c0_i32_0 : i32, i32
  }
  func.func @transform_4(%arg0: i32) -> (i32, i32) {
    %c0_i32 = arith.constant 0 : i32
    %c0_i32_0 = arith.constant 0 : i32
    %c0_i32_1 = arith.constant 0 : i32
    return %c0_i32, %c0_i32_0 : i32, i32
  }
  func.func @transform_5(%arg0: i32) -> (i32, i32) {
    %c0_i32 = arith.constant 0 : i32
    %c0_i32_0 = arith.constant 0 : i32
    %c0_i32_1 = arith.constant 0 : i32
    return %c0_i32, %c0_i32_0 : i32, i32
  }
  func.func @transform_6(%arg0: i32) -> (i32, i32) {
    %c0_i32 = arith.constant 0 : i32
    %c0_i32_0 = arith.constant 0 : i32
    %c0_i32_1 = arith.constant 0 : i32
    return %c0_i32, %c0_i32_0 : i32, i32
  }
  func.func @transform_7(%arg0: i32) -> (i32, i32) {
    %c0_i32 = arith.constant 0 : i32
    %c0_i32_0 = arith.constant 0 : i32
    %c0_i32_1 = arith.constant 0 : i32
    return %c0_i32, %c0_i32_0 : i32, i32
  }
  func.func @transform_8(%arg0: i32) -> (i32, i32) {
    %c0_i32 = arith.constant 0 : i32
    %c0_i32_0 = arith.constant 0 : i32
    %c0_i32_1 = arith.constant 0 : i32
    return %c0_i32, %c0_i32_0 : i32, i32
  }
  func.func @transform_9(%arg0: i32) -> (i32, i32) {
    %c0_i32 = arith.constant 0 : i32
    %c0_i32_0 = arith.constant 0 : i32
    return %arg0, %c0_i32 : i32, i32
  }
}

</mosaic_0001>

<bundles_post_ra>
// kernel: lbp_forward.1
= control target key start
LH: loop header
LB: loop body
LE: loop exit
PB: predicated region body
PF: predicated region fallthrough
CT: control target
= control target key end

     0   :  { %s2098_s30 = smov 0   ;;  %s2543_s0 = inlined_call_operand.vmem [shape: bf16[32,768], index: 0, kind: input, shape index: {}]   ;;  %s2544_s1 = inlined_call_operand.vmem [shape: bf16[768,256], index: 1, kind: input, shape index: {}]   ;;  %s2545_s2 = inlined_call_operand.vmem [shape: f32[1,256], index: 2, kind: input, shape index: {}]   ;;  %s2546_s3 = inlined_call_operand.vmem [shape: bf16[256,128], index: 3, kind: input, shape index: {}]   ;;  %s2547_s4 = inlined_call_operand.vmem [shape: f32[1,128], index: 4, kind: input, shape index: {}]   ;;  %s2548_s5 = inlined_call_operand.vmem [shape: bf16[128,128], index: 5, kind: input, shape index: {}]   ;;  %s2549_s6 = inlined_call_operand.vmem [shape: f32[1,128], index: 6, kind: input, shape index: {}]   ;;  %s2550_s7 = inlined_call_operand.vmem [shape: bf16[128,128], index: 7, kind: input, shape index: {}]   ;;  %s2551_s8 = inlined_call_operand.vmem [shape: f32[1,128], index: 8, kind: input, shape index: {}]   ;;  %s2552_s9 = inlined_call_operand.vmem [shape: f32[32,2], index: 9, kind: output, shape index: {}]  }
   0x1 LB: > { %s1592_s10 = sadd.s32 4294967295, %s2044_s30   ;;  %p1596_p0 = scmp.ge.s32.totalorder %s2044_s30, 1  ;;  %s2044_s30 = sphi %s2098_s30, %s19_s30  }
   0x2   : > { %p289_p1 = scmp.lt.s32.totalorder %s2044_s30, 3 }
   0x4   : > { %p290_p2 = pnand %p1596_p0, %p289_p1 }
   0x5   : > { %v1845_v0 = vld [vmem:[%s2544_s1 + $0x104] ss:$8 sps:$4 sm:$0xff] (!%p290_p2)   ;;  %v1847_v1 = vld [vmem:[%s2544_s1 + $0x100] ss:$8 sps:$4 sm:$0xff] (!%p290_p2)   ;;  %v1848_v2 = vld [vmem:[%s2544_s1 + $0x114] ss:$8 sps:$4 sm:$0xff] (!%p290_p2)  }
   0x6   : > { %293 = sbr.rel (%p290_p2) target bundleno = 1045 (0x415), region = 56  ;;  %1007 = vmatprep.subr.bf16.mxu0 (!%p290_p2), %v1845_v0  ;;  %v1850_v3 = vld [vmem:[%s2544_s1 + $0x110] ss:$8 sps:$4 sm:$0xff] (!%p290_p2)   ;;  %v1851_v4 = vld [vmem:[%s2544_s1 + $0x124] ss:$8 sps:$4 sm:$0xff] (!%p290_p2)   ;;  %s1597_s23 = sshll.u32 (!%p290_p2), %s1592_s10, 1 }
   0x7   : > { %1008 = vmatpush1.bf16.msra.mxu0 (!%p290_p2), %v1847_v1  ;;  %v1853_v5 = vld [vmem:[%s2544_s1 + $0x120] ss:$8 sps:$4 sm:$0xff] (!%p290_p2)   ;;  %v1854_v6 = vld [vmem:[%s2544_s1 + $0x134] ss:$8 sps:$4 sm:$0xff] (!%p290_p2)   ;;  %p327_p3 = scmp.lt.s32.totalorder (!%p290_p2), %s1597_s23, 3  ;;  %vm2047_vm4 = vmmov (!%p290_p2), 0  }
   0x8   : > { %1009 = vmatprep.subr.bf16.mxu0 (!%p290_p2), %v1848_v2  ;;  %v1856_v7 = vld [vmem:[%s2544_s1 + $0x130] ss:$8 sps:$4 sm:$0xff] (!%p290_p2)   ;;  %v1857_v8 = vld [vmem:[%s2544_s1 + $0x144] ss:$8 sps:$4 sm:$0xff] (!%p290_p2)   ;;  %v1859_v9 = vld [vmem:[%s2544_s1 + $0x140] ss:$8 sps:$4 sm:$0xff] (!%p290_p2)  }
   0x9   : > { %v1860_v10 = vld [vmem:[%s2544_s1 + $0x154] ss:$8 sps:$4 sm:$0xff] (!%p290_p2)   ;;  %v1862_v11 = vld [vmem:[%s2544_s1 + $0x150] ss:$8 sps:$4 sm:$0xff] (!%p290_p2)   ;;  %v1863_v12 = vld [vmem:[%s2544_s1 + $0x164] ss:$8 sps:$4 sm:$0xff] (!%p290_p2)  }
   0xa   : > { %v1890_v13 = vld [vmem:[%s2544_s1 + $0x4] ss:$8 sps:$4 sm:$0xff] (!%p290_p2)   ;;  %v1892_v14 = vld [vmem:[%s2544_s1] ss:$8 sps:$4 sm:$0xff] (!%p290_p2)   ;;  %v1896_v16 = vld [vmem:[%s2544_s1 + $0x14] ss:$8 sps:$4 sm:$0xff] (!%p290_p2)  }
   0xb   : > { %1010 = vmatpush1.bf16.msra.mxu0 (!%p290_p2), %v1850_v3  ;;  %v1865_v15 = vld [vmem:[%s2544_s1 + $0x160] ss:$8 sps:$4 sm:$0xff] (!%p290_p2)   ;;  %964 = vmatprep.subr.bf16.mxu1 (!%p290_p2), %v1890_v13  ;;  %v1898_v17 = vld [vmem:[%s2544_s1 + $0x10] ss:$8 sps:$4 sm:$0xff] (!%p290_p2)   ;;  %v1866_v18 = vld [vmem:[%s2544_s1 + $0x174] ss:$8 sps:$4 sm:$0xff] (!%p290_p2)  }
   0xc   : > { %1011 = vmatprep.subr.bf16.mxu0 (!%p290_p2), %v1851_v4  ;;  %965 = vmatpush1.bf16.msra.mxu1 (!%p290_p2), %v1892_v14  ;;  %v1868_v20 = vld [vmem:[%s2544_s1 + $0x170] ss:$8 sps:$4 sm:$0xff] (!%p290_p2)   ;;  %v1905_v21 = vld [vmem:[%s2544_s1 + $0x24] ss:$8 sps:$4 sm:$0xff] (!%p290_p2)   ;;  %v1907_v22 = vld [vmem:[%s2544_s1 + $0x20] ss:$8 sps:$4 sm:$0xff] (!%p290_p2)  }
   0xd   : > { %s2554_s23 = smov (!%p327_p3, %s1597_s23), 3  ;;  %966 = vmatprep.subr.bf16.mxu1 %v1896_v16  ;;  %v1869_v23 = vld [vmem:[%s2544_s1 + $0x184] ss:$8 sps:$4 sm:$0xff]   ;;  %v1871_v24 = vld [vmem:[%s2544_s1 + $0x180] ss:$8 sps:$4 sm:$0xff]   ;;  %vm1533_vm9 = vcmask 15360  }
   0xe   : > { %s1834_s14 = smul.u32 24, %s2554_s23  ;;  %v1911_v25 = vld [vmem:[%s2544_s1 + $0x34] ss:$8 sps:$4 sm:$0xff]   ;;  %v1913_v27 = vld [vmem:[%s2544_s1 + $0x30] ss:$8 sps:$4 sm:$0xff]   ;;  %s1600_s22 = sshll.u32 %s2554_s23, 3 }
   0xf   : > { %1012 = vmatpush1.bf16.msra.mxu0 %v1853_v5  ;;  %v1872_v26 = vld [vmem:[%s2544_s1 + $0x194] ss:$8 sps:$4 sm:$0xff]   ;;  %v1917_v28 = vld [vmem:[%s2544_s1 + $0x44] ss:$8 sps:$4 sm:$0xff]   ;;  %v1874_v29 = vld [vmem:[%s2544_s1 + $0x190] ss:$8 sps:$4 sm:$0xff]   ;;  %s337_s26 = scalar_lea.vmem %s2552_s9, %s1600_s22 }
  0x10   : > { %1013 = vmatprep.subr.bf16.mxu0 %v1854_v6  ;;  %s2160_s28 = scalar_lea.vmem %s2543_s0, %s1834_s14  ;;  %967 = vmatpush1.bf16.msra.mxu1 %v1898_v17  ;;  %v1875_v30 = vld [vmem:[%s2544_s1 + $0x1a4] ss:$8 sps:$4 sm:$0xff]   ;;  %v1919_v31 = vld [vmem:[%s2544_s1 + $0x40] ss:$8 sps:$4 sm:$0xff]   ;;  %v1923_v32 = vld [vmem:[%s2544_s1 + $0x54] ss:$8 sps:$4 sm:$0xff]  }
  0x11   : > { %v1901_v19 = vld [vmem:[%s2160_s28 + $0xc] ss:$24 sps:$4 sm:$0xff]   ;;  %968 = vmatprep.subr.bf16.mxu1 %v1905_v21  ;;  %v1877_v33 = vld [vmem:[%s2544_s1 + $0x1a0] ss:$8 sps:$4 sm:$0xff]   ;;  %v1878_v34 = vld [vmem:[%s2544_s1 + $0x1b4] ss:$8 sps:$4 sm:$0xff]  }
  0x12   : > { %1039 = vmatprep.mubr.bf16.mxu0 %v1901_v19  ;;  %v1925_v35 = vld [vmem:[%s2544_s1 + $0x50] ss:$8 sps:$4 sm:$0xff]   ;;  %v1929_v36 = vld [vmem:[%s2544_s1 + $0x64] ss:$8 sps:$4 sm:$0xff]   ;;  %v1931_v39 = vld [vmem:[%s2544_s1 + $0x60] ss:$8 sps:$4 sm:$0xff]  }
  0x13   : > { %1014 = vmatpush1.bf16.msra.mxu0 %v1856_v7  ;;  %v1880_v37 = vld [vmem:[%s2544_s1 + $0x1b0] ss:$8 sps:$4 sm:$0xff]   ;;  %v1881_v38 = vld [vmem:[%s2544_s1 + $0x1c4] ss:$8 sps:$4 sm:$0xff]   ;;  %v1935_v40 = vld [vmem:[%s2544_s1 + $0x74] ss:$8 sps:$4 sm:$0xff]  }
  0x14   : > { %1015 = vmatprep.subr.bf16.mxu0 %v1857_v8  ;;  %969 = vmatpush1.bf16.msra.mxu1 %v1907_v22  ;;  %v1883_v41 = vld [vmem:[%s2544_s1 + $0x1c0] ss:$8 sps:$4 sm:$0xff]   ;;  %v1884_v42 = vld [vmem:[%s2544_s1 + $0x1d4] ss:$8 sps:$4 sm:$0xff]   ;;  %v1937_v43 = vld [vmem:[%s2544_s1 + $0x70] ss:$8 sps:$4 sm:$0xff]  }
  0x15   : > { %970 = vmatprep.subr.bf16.mxu1 %v1911_v25  ;;  %v1941_v44 = vld [vmem:[%s2544_s1 + $0x84] ss:$8 sps:$4 sm:$0xff]   ;;  %v1886_v45 = vld [vmem:[%s2544_s1 + $0x1d0] ss:$8 sps:$4 sm:$0xff]   ;;  %v1943_v47 = vld [vmem:[%s2544_s1 + $0x80] ss:$8 sps:$4 sm:$0xff]  }
  0x16   : > { %v1887_v46 = vld [vmem:[%s2544_s1 + $0x1e4] ss:$8 sps:$4 sm:$0xff]   ;;  %v1947_v48 = vld [vmem:[%s2544_s1 + $0x94] ss:$8 sps:$4 sm:$0xff]   ;;  %v1889_v49 = vld [vmem:[%s2544_s1 + $0x1e0] ss:$8 sps:$4 sm:$0xff]  }
  0x17   : > { %1016 = vmatpush1.bf16.msra.mxu0 %v1859_v9  ;;  %v1893_v50 = vld [vmem:[%s2544_s1 + $0x1f4] ss:$8 sps:$4 sm:$0xff]   ;;  %v1949_v51 = vld [vmem:[%s2544_s1 + $0x90] ss:$8 sps:$4 sm:$0xff]   ;;  %v1953_v52 = vld [vmem:[%s2544_s1 + $0xa4] ss:$8 sps:$4 sm:$0xff]  }
  0x18   : > { %1017 = vmatprep.subr.bf16.mxu0 %v1860_v10  ;;  %971 = vmatpush1.bf16.msra.mxu1 %v1913_v27  ;;  %v1895_v53 = vld [vmem:[%s2544_s1 + $0x1f0] ss:$8 sps:$4 sm:$0xff]   ;;  %v1904_v54 = vld [vmem:[%s2544_s1 + $0x204] ss:$8 sps:$4 sm:$0xff]   ;;  %v1955_v55 = vld [vmem:[%s2544_s1 + $0xa0] ss:$8 sps:$4 sm:$0xff]  }
  0x19   : > { %972 = vmatprep.subr.bf16.mxu1 %v1917_v28  ;;  %v1959_v56 = vld [vmem:[%s2544_s1 + $0xb4] ss:$8 sps:$4 sm:$0xff]   ;;  %v1899_v57 = vld [vmem:[%s2160_s28 + $0x8] ss:$24 sps:$4 sm:$0xff]   ;;  %v1961_v60 = vld [vmem:[%s2544_s1 + $0xb0] ss:$8 sps:$4 sm:$0xff]  }
  0x1a   : > { %v1902_v58 = vld [vmem:[%s2544_s1 + $0x200] ss:$8 sps:$4 sm:$0xff]   ;;  %v1910_v59 = vld [vmem:[%s2544_s1 + $0x214] ss:$8 sps:$4 sm:$0xff]   ;;  %v1965_v61 = vld [vmem:[%s2544_s1 + $0xc4] ss:$8 sps:$4 sm:$0xff]  }
  0x1b   : > { %1018 = vmatpush1.bf16.msra.mxu0 %v1862_v11  ;;  %v1991_v62 = vld [vmem:[%s2160_s28 + $0x4] ss:$24 sps:$4 sm:$0xff]   ;;  %v1908_v63 = vld [vmem:[%s2544_s1 + $0x210] ss:$8 sps:$4 sm:$0xff]   ;;  %v1967_v1 = vld [vmem:[%s2544_s1 + $0xc0] ss:$8 sps:$4 sm:$0xff]  }
  0x1c   : > { %1019 = vmatprep.subr.bf16.mxu0 %v1863_v12  ;;  %973 = vmatpush1.bf16.msra.mxu1 %v1919_v31  ;;  %v1916_v0 = vld [vmem:[%s2544_s1 + $0x224] ss:$8 sps:$4 sm:$0xff]   ;;  %v1971_v3 = vld [vmem:[%s2544_s1 + $0xd4] ss:$8 sps:$4 sm:$0xff]   ;;  %v1914_v4 = vld [vmem:[%s2544_s1 + $0x220] ss:$8 sps:$4 sm:$0xff]  }
  0x1d   : > { %974 = vmatprep.subr.bf16.mxu1 %v1923_v32  ;;  %v1997_v2 = vld [vmem:[%s2160_s28 + $0x14] ss:$24 sps:$4 sm:$0xff]   ;;  %996 = vmatprep.mubr.bf16.mxu1 %v1991_v62  ;;  %v1973_v6 = vld [vmem:[%s2544_s1 + $0xd0] ss:$8 sps:$4 sm:$0xff]   ;;  %v1979_v10 = vld [vmem:[%s2544_s1 + $0xe0] ss:$8 sps:$4 sm:$0xff]  }
  0x1e   : > { %v1922_v5 = vld [vmem:[%s2544_s1 + $0x234] ss:$8 sps:$4 sm:$0xff]   ;;  %v1977_v7 = vld [vmem:[%s2544_s1 + $0xe4] ss:$8 sps:$4 sm:$0xff]   ;;  %v1920_v8 = vld [vmem:[%s2544_s1 + $0x230] ss:$8 sps:$4 sm:$0xff]  }
  0x1f   : > { %1020 = vmatpush1.bf16.msra.mxu0 %v1865_v15  ;;  %v1928_v9 = vld [vmem:[%s2544_s1 + $0x244] ss:$8 sps:$4 sm:$0xff]   ;;  %v1983_v11 = vld [vmem:[%s2544_s1 + $0xf4] ss:$8 sps:$4 sm:$0xff]   ;;  %v1926_v12 = vld [vmem:[%s2544_s1 + $0x240] ss:$8 sps:$4 sm:$0xff]  }
  0x20   : > { %1021 = vmatprep.subr.bf16.mxu0 %v1866_v18  ;;  %975 = vmatpush1.bf16.msra.mxu1 %v1925_v35  ;;  %v1985_v13 = vld [vmem:[%s2544_s1 + $0xf0] ss:$8 sps:$4 sm:$0xff]   ;;  %v1934_v14 = vld [vmem:[%s2544_s1 + $0x254] ss:$8 sps:$4 sm:$0xff]   ;;  %v1998_v15 = vld [vmem:[%s2546_s3 + $0x40] sm:$0xff]  }
  0x21   : > { %976 = vmatprep.subr.bf16.mxu1 %v1929_v36  ;;  %v1989_v16 = vld [vmem:[%s2160_s28] ss:$24 sps:$4 sm:$0xff]   ;;  %v1940_v19 = vld [vmem:[%s2544_s1 + $0x264] ss:$8 sps:$4 sm:$0xff]   ;;  %v1958_v31 = vld [vmem:[%s2544_s1 + $0x294] ss:$8 sps:$4 sm:$0xff]  }
  0x22   : > { %v1932_v17 = vld [vmem:[%s2544_s1 + $0x250] ss:$8 sps:$4 sm:$0xff]   ;;  %v1999_v18 = vld [vmem:[%s2546_s3] sm:$0xff]   ;;  %v2001_v22 = vld [vmem:[%s2546_s3 + $0x8] sm:$0xff]  }
  0x23   : > { %1022 = vmatpush1.bf16.msra.mxu0 %v1868_v20  ;;  %v2000_v20 = vld [vmem:[%s2546_s3 + $0x48] sm:$0xff]   ;;  %v1944_v25 = vld [vmem:[%s2544_s1 + $0x270] ss:$8 sps:$4 sm:$0xff]   ;;  %v1970_v35 = vld [vmem:[%s2544_s1 + $0x2b4] ss:$8 sps:$4 sm:$0xff]  }
  0x24   : > { %1023 = vmatprep.subr.bf16.mxu0 %v1869_v23  ;;  %977 = vmatpush1.bf16.msra.mxu1 %v1931_v39  ;;  %v1938_v21 = vld [vmem:[%s2544_s1 + $0x260] ss:$8 sps:$4 sm:$0xff]   ;;  %v1946_v23 = vld [vmem:[%s2544_s1 + $0x274] ss:$8 sps:$4 sm:$0xff]   ;;  %v1952_v27 = vld [vmem:[%s2544_s1 + $0x284] ss:$8 sps:$4 sm:$0xff]  }
  0x25   : > { %978 = vmatprep.subr.bf16.mxu1 %v1935_v40  ;;  %v2004_v28 = vld [vmem:[%s2546_s3 + $0x58] sm:$0xff]   ;;  %v442_v62 = vld [vmem:[%s2545_s2] sm:$0x3] }
  0x26   : > { %v1956_v32 = vld [vmem:[%s2544_s1 + $0x290] ss:$8 sps:$4 sm:$0xff]   ;;  %v1982_v39 = vld [vmem:[%s2544_s1 + $0x2d4] ss:$8 sps:$4 sm:$0xff]  }
  0x27   : > { %1024 = vmatpush1.bf16.msra.mxu0 %v1871_v24  ;;  %v2002_v24 = vld [vmem:[%s2546_s3 + $0x50] sm:$0xff]  }
  0x28   : > { %1025 = vmatprep.subr.bf16.mxu0 %v1872_v26  ;;  %979 = vmatpush1.bf16.msra.mxu1 %v1937_v43  ;;  %v2003_v26 = vld [vmem:[%s2546_s3 + $0x10] sm:$0xff]  }
  0x29   : > { %980 = vmatprep.subr.bf16.mxu1 %v1941_v44  ;;  %v1968_v36 = vld [vmem:[%s2544_s1 + $0x2b0] ss:$8 sps:$4 sm:$0xff]   ;;  %v1994_v43 = vld [vmem:[%s2544_s1 + $0x2f4] ss:$8 sps:$4 sm:$0xff]  }
  0x2a   : > { %v1980_v40 = vld [vmem:[%s2544_s1 + $0x2d0] ss:$8 sps:$4 sm:$0xff]  }
  0x2b   : > { %1026 = vmatpush1.bf16.msra.mxu0 %v1874_v29  ;;  %v1950_v29 = vld [vmem:[%s2544_s1 + $0x280] ss:$8 sps:$4 sm:$0xff]   ;;  %v1992_v44 = vld [vmem:[%s2544_s1 + $0x2f0] ss:$8 sps:$4 sm:$0xff]  }
  0x2c   : > { %1027 = vmatprep.subr.bf16.mxu0 %v1875_v30  ;;  %981 = vmatpush1.bf16.msra.mxu1 %v1943_v47  ;;  %v2005_v30 = vld [vmem:[%s2546_s3 + $0x18] sm:$0xff]   ;;  %v2007_v47 = vld [vmem:[%s2546_s3 + $0x20] sm:$0xff]  }
  0x2d   : > { %982 = vmatprep.subr.bf16.mxu1 %v1947_v48  ;;  %v2008_v48 = vld [vmem:[%s2546_s3 + $0x68] sm:$0xff]  }
  0x2f   : > { %1028 = vmatpush1.bf16.msra.mxu0 %v1877_v33  ;;  %v1964_v33 = vld [vmem:[%s2544_s1 + $0x2a4] ss:$8 sps:$4 sm:$0xff]  }
  0x30   : > { %1029 = vmatprep.subr.bf16.mxu0 %v1878_v34  ;;  %983 = vmatpush1.bf16.msra.mxu1 %v1949_v51  ;;  %v1962_v34 = vld [vmem:[%s2544_s1 + $0x2a0] ss:$8 sps:$4 sm:$0xff]   ;;  %v2011_v51 = vld [vmem:[%s2546_s3 + $0x30] sm:$0xff]  }
  0x31   : > { %984 = vmatprep.subr.bf16.mxu1 %v1953_v52  ;;  %v2012_v52 = vld [vmem:[%s2546_s3 + $0x78] sm:$0xff]  }
  0x33   : > { %1030 = vmatpush1.bf16.msra.mxu0 %v1880_v37  ;;  %v1976_v37 = vld [vmem:[%s2544_s1 + $0x2c4] ss:$8 sps:$4 sm:$0xff]  }
  0x34   : > { %1031 = vmatprep.subr.bf16.mxu0 %v1881_v38  ;;  %985 = vmatpush1.bf16.msra.mxu1 %v1955_v55  ;;  %v1974_v38 = vld [vmem:[%s2544_s1 + $0x2c0] ss:$8 sps:$4 sm:$0xff]  }
  0x35   : > { %986 = vmatprep.subr.bf16.mxu1 %v1959_v56 }
  0x37   : > { %1032 = vmatpush1.bf16.msra.mxu0 %v1883_v41  ;;  %v1988_v41 = vld [vmem:[%s2544_s1 + $0x2e4] ss:$8 sps:$4 sm:$0xff]  }
  0x38   : > { %1033 = vmatprep.subr.bf16.mxu0 %v1884_v42  ;;  %987 = vmatpush1.bf16.msra.mxu1 %v1961_v60  ;;  %v1986_v42 = vld [vmem:[%s2544_s1 + $0x2e0] ss:$8 sps:$4 sm:$0xff]  }
  0x39   : > { %988 = vmatprep.subr.bf16.mxu1 %v1965_v61 }
  0x3b   : > { %1034 = vmatpush1.bf16.msra.mxu0 %v1886_v45  ;;  %v1995_v45 = vld [vmem:[%s2160_s28 + $0x10] ss:$24 sps:$4 sm:$0xff]  }
  0x3c   : > { %1035 = vmatprep.subr.bf16.mxu0 %v1887_v46  ;;  %989 = vmatpush1.bf16.msra.mxu1 %v1967_v1  ;;  %v2006_v46 = vld [vmem:[%s2546_s3 + $0x60] sm:$0xff]  }
  0x3d   : > { %990 = vmatprep.subr.bf16.mxu1 %v1971_v3 }
  0x3f   : > { %1036 = vmatpush1.bf16.msra.mxu0 %v1889_v49  ;;  %v2009_v49 = vld [vmem:[%s2546_s3 + $0x28] sm:$0xff]  }
  0x40   : > { %1037 = vmatprep.subr.bf16.mxu0 %v1893_v50  ;;  %991 = vmatpush1.bf16.msra.mxu1 %v1973_v6  ;;  %v2010_v50 = vld [vmem:[%s2546_s3 + $0x70] sm:$0xff]  }
  0x41   : > { %992 = vmatprep.subr.bf16.mxu1 %v1977_v7 }
  0x43   : > { %1038 = vmatpush1.bf16.msra.mxu0 %v1895_v53  ;;  %v2013_v53 = vld [vmem:[%s2546_s3 + $0x38] sm:$0xff]  }
  0x44   : > { %1050 = vmatprep.subr.bf16.mxu0 %v1904_v54  ;;  %993 = vmatpush1.bf16.msra.mxu1 %v1979_v10  ;;  %v2046_v54 = vmov 0.0  }
  0x45   : > { %994 = vmatprep.subr.bf16.mxu1 %v1983_v11 }
  0x46   : > { %1040 = vmatmul.mubr.bf16.vlgmr.msra.gmra.mrb[0].mxu0 %v1899_v57 }
  0x47   : > { %1051 = vmatpush1.bf16.msra.mxu0 %v1902_v58  ;;  %1082 = vmatprep.mubr.bf16.mxu0 %v1997_v2 }
  0x48   : > { %1052 = vmatprep.subr.bf16.mxu0 %v1910_v59  ;;  %995 = vmatpush1.bf16.msra.mxu1 %v1985_v13  ;;  %v444_v59 = vlaneseq }
  0x49   : > { %1742 = vmatprep.subr.bf16.mxu1 %v1998_v15 }
  0x4a   : > { %v445_v60 = vshrl.u32 %v444_v59, 7 }
  0x4b   : > { %1053 = vmatpush1.bf16.msra.mxu0 %v1908_v63  ;;  %997 = vmatmul.mubr.bf16.vlgmr.msra.gmra.mrb[0].mxu1 %v1989_v16 }
  0x4c   : > { %1054 = vmatprep.subr.bf16.mxu0 %v1916_v0  ;;  %1743 = vmatpush3.bf16.msra.mxu1 %v1999_v18  ;;  %v446_v61 = vsub.s32 0, %v445_v60  ;;  %v450_v63 = vsub.s32 1, %v445_v60 }
  0x4d   : > { %1744 = vmatprep.subr.bf16.mxu1 %v2000_v20 }
  0x4e   : > { %v447_v0 = vrot.slane %v442_v62, %v446_v61  ;;  %v451_v1 = vrot.slane %v442_v62, %v450_v63 }
  0x4f   : > { %1055 = vmatpush1.bf16.msra.mxu0 %v1914_v4 }
  0x50   : > { %1056 = vmatprep.subr.bf16.mxu0 %v1922_v5  ;;  %1745 = vmatpush3.bf16.msra.mxu1 %v2001_v22 }
  0x51   : > { %1746 = vmatprep.subr.bf16.mxu1 %v2002_v24  ;;  %v2014_v24 = vld [vmem:[%s2548_s5] sm:$0xff]  }
  0x53   : > { %1057 = vmatpush1.bf16.msra.mxu0 %v1920_v8 }
  0x54   : > { %1058 = vmatprep.subr.bf16.mxu0 %v1928_v9  ;;  %1747 = vmatpush3.bf16.msra.mxu1 %v2003_v26  ;;  %v2016_v26 = vld [vmem:[%s2548_s5 + $0x10] sm:$0xff]  }
  0x55   : > { %1748 = vmatprep.subr.bf16.mxu1 %v2004_v28  ;;  %v2018_v28 = vld [vmem:[%s2548_s5 + $0x20] sm:$0xff]  }
  0x57   : > { %1059 = vmatpush1.bf16.msra.mxu0 %v1926_v12 }
  0x58   : > { %1060 = vmatprep.subr.bf16.mxu0 %v1934_v14  ;;  %1749 = vmatpush3.bf16.msra.mxu1 %v2005_v30  ;;  %v2020_v30 = vld [vmem:[%s2548_s5 + $0x30] sm:$0xff]  }
  0x59   : > { %1750 = vmatprep.subr.bf16.mxu1 %v2006_v46 }
  0x5b   : > { %1061 = vmatpush1.bf16.msra.mxu0 %v1932_v17 }
  0x5c   : > { %1062 = vmatprep.subr.bf16.mxu0 %v1940_v19  ;;  %1751 = vmatpush3.bf16.msra.mxu1 %v2007_v47  ;;  %v2023_v47 = vld [vmem:[%s2550_s7 + $0x8] sm:$0xff]  }
  0x5d   : > { %1752 = vmatprep.subr.bf16.mxu1 %v2008_v48  ;;  %v2024_v48 = vld [vmem:[%s2550_s7 + $0x10] sm:$0xff]  }
  0x5f   : > { %1063 = vmatpush1.bf16.msra.mxu0 %v1938_v21 }
  0x60   : > { %1064 = vmatprep.subr.bf16.mxu0 %v1946_v23  ;;  %1753 = vmatpush3.bf16.msra.mxu1 %v2009_v49  ;;  %v2025_v49 = vld [vmem:[%s2550_s7 + $0x18] sm:$0xff]  }
  0x61   : > { %1754 = vmatprep.subr.bf16.mxu1 %v2010_v50  ;;  %v2026_v50 = vld [vmem:[%s2550_s7 + $0x20] sm:$0xff]  }
  0x63   : > { %1065 = vmatpush1.bf16.msra.mxu0 %v1944_v25  ;;  %v2015_v25 = vld [vmem:[%s2548_s5 + $0x8] sm:$0xff]  }
  0x64   : > { %1066 = vmatprep.subr.bf16.mxu0 %v1952_v27  ;;  %1755 = vmatpush3.bf16.msra.mxu1 %v2011_v51  ;;  %v2017_v27 = vld [vmem:[%s2548_s5 + $0x18] sm:$0xff]   ;;  %v2027_v51 = vld [vmem:[%s2550_s7 + $0x28] sm:$0xff]  }
  0x65   : > { %1756 = vmatprep.subr.bf16.mxu1 %v2012_v52  ;;  %v2028_v52 = vld [vmem:[%s2550_s7 + $0x30] sm:$0xff]  }
  0x67   : > { %1067 = vmatpush1.bf16.msra.mxu0 %v1950_v29  ;;  %v2019_v29 = vld [vmem:[%s2548_s5 + $0x28] sm:$0xff]  }
  0x68   : > { %1068 = vmatprep.subr.bf16.mxu0 %v1958_v31  ;;  %1757 = vmatpush3.bf16.msra.mxu1 %v2013_v53  ;;  %v2021_v31 = vld [vmem:[%s2548_s5 + $0x38] sm:$0xff]  }
  0x69   : > { %1782 = vmatprep.subr.bf16.mxu1 %v2046_v54  ;;  %v2029_v53 = vld [vmem:[%s2550_s7 + $0x38] sm:$0xff]  }
  0x6b   : > { %1069 = vmatpush1.bf16.msra.mxu0 %v1956_v32 }
  0x6c   : > { %1070 = vmatprep.subr.bf16.mxu0 %v1964_v33  ;;  %v1703_v33 = vld [vmem:[%s2547_s4] ss:$0 sm:$0xff] }
  0x6f   : > { %1071 = vmatpush1.bf16.msra.mxu0 %v1962_v34 }
  0x70   : > { %1072 = vmatprep.subr.bf16.mxu0 %v1970_v35 }
  0x73   : > { %1073 = vmatpush1.bf16.msra.mxu0 %v1968_v36 }
  0x74   : > { %1074 = vmatprep.subr.bf16.mxu0 %v1976_v37 }
  0x77   : > { %1075 = vmatpush1.bf16.msra.mxu0 %v1974_v38 }
  0x78   : > { %1076 = vmatprep.subr.bf16.mxu0 %v1982_v39 }
  0x7b   : > { %1077 = vmatpush1.bf16.msra.mxu0 %v1980_v40 }
  0x7c   : > { %1078 = vmatprep.subr.bf16.mxu0 %v1988_v41 }
  0x7f   : > { %1079 = vmatpush1.bf16.msra.mxu0 %v1986_v42 }
  0x80   : > { %1080 = vmatprep.subr.bf16.mxu0 %v1994_v43 }
  0x83   : > { %1081 = vmatpush1.bf16.msra.mxu0 %v1992_v44 }
  0x86   : > { %1083 = vmatmul.mubr.bf16.vlgmr.msra.gmra.mrb[0].mxu0 %v1995_v45  ;;  %v2022_v45 = vld [vmem:[%s2550_s7] sm:$0xff]  }
 0x11e   : > { %v998_v55 = vpop.f32.mrb[0].mxu1 }
 0x11f   : > { %v1000_v56 = vpop.f32.mrb[1].mxu1  ;;  %v999_v2 = vadd.f32 %v998_v55, %v447_v0  ;;  %v1720_v55 = vld [vmem:[%s2549_s6] ss:$0 sm:$0xff] }
 0x120   : > { %v1002_v57 = vpop.f32.mrb[2].mxu1  ;;  %v1001_v3 = vadd.f32 %v1000_v56, %v451_v1 }
 0x121   : > { %v1004_v58 = vpop.f32.mrb[3].mxu1  ;;  %v1003_v5 = vadd.f32 %v1002_v57, %v447_v0 }
 0x122   : > { %v1005_v8 = vadd.f32 %v1004_v58, %v451_v1 }
 0x159   : > { %v1084_v4 = vpop.f32.mrb[0].mxu0 }
 0x15a   : > { %v1823_v6 = vadd.f32 %v1084_v4, %v999_v2  ;;  %v1086_v7 = vpop.f32.mrb[1].mxu0  ;;  %v1729_v2 = vld [vmem:[%s2551_s8] ss:$0 sm:$0xff] }
 0x15b   : > { %v1825_v9 = vadd.f32 %v1086_v7, %v1001_v3  ;;  %v1088_v10 = vpop.f32.mrb[2].mxu0 }
 0x15c   : > { %v1097_v11 = vmul.f32 0.01, %v1823_v6  ;;  %v1827_v12 = vadd.f32 %v1088_v10, %v1003_v5  ;;  %v1090_v13 = vpop.f32.mrb[3].mxu0  ;;  %vm1093_vm0 = vcmp.ge.f32.partialorder %v1823_v6, 0.0 }
 0x15d   : > { %v1098_v14 = vmul.f32 0.01, %v1825_v9  ;;  %v1829_v15 = vadd.f32 %v1090_v13, %v1005_v8  ;;  %vm1094_vm1 = vcmp.ge.f32.partialorder %v1825_v9, 0.0 }
 0x15e   : > { %vm1095_vm2 = vcmp.ge.f32.partialorder %v1827_v12, 0.0  ;;  %v1099_v16 = vmul.f32 0.01, %v1827_v12  ;;  %v1101_v18 = vsel %vm1093_vm0, %v1823_v6, %v1097_v11 }
 0x15f   : > { %vm1096_vm3 = vcmp.ge.f32.partialorder %v1829_v15, 0.0  ;;  %v1100_v17 = vmul.f32 0.01, %v1829_v15  ;;  %v1102_v21 = vsel %vm1094_vm1, %v1825_v9, %v1098_v14 }
 0x160   : > { %v1103_v19 = vsel %vm1095_vm2, %v1827_v12, %v1099_v16 }
 0x161   : > { %v1105_v20 = vpack.c.bf16 %v1103_v19, %v1101_v18  ;;  %v1104_v22 = vsel %vm1096_vm3, %v1829_v15, %v1100_v17 }
 0x162   : > { %v1106_v23 = vpack.c.bf16 %v1104_v22, %v1102_v21 }
 0x164   : > { %1274 = vmatprep.mubr.bf16.mxu1 %v1106_v23 }
 0x165   : > { %1275 = vmatmul.mubr.bf16.vlgmr.msra.gmra.mrb[4].mxu1 %v1105_v20 }
 0x166   : > { %1783 = vmatpush3.bf16.msra.mxu1 %v2014_v24  ;;  %1798 = vmatprep.mubr.msk.bf16.mxu1 %vm2047_vm4, %v2046_v54 }
 0x167   : > { %1784 = vmatprep.subr.bf16.mxu1 %v2046_v54 }
 0x16a   : > { %1785 = vmatpush3.bf16.msra.mxu1 %v2015_v25 }
 0x16b   : > { %1786 = vmatprep.subr.bf16.mxu1 %v2046_v54 }
 0x16e   : > { %1787 = vmatpush3.bf16.msra.mxu1 %v2016_v26 }
 0x16f   : > { %1788 = vmatprep.subr.bf16.mxu1 %v2046_v54 }
 0x172   : > { %1789 = vmatpush3.bf16.msra.mxu1 %v2017_v27 }
 0x173   : > { %1790 = vmatprep.subr.bf16.mxu1 %v2046_v54 }
 0x176   : > { %1791 = vmatpush3.bf16.msra.mxu1 %v2018_v28 }
 0x177   : > { %1792 = vmatprep.subr.bf16.mxu1 %v2046_v54 }
 0x17a   : > { %1793 = vmatpush3.bf16.msra.mxu1 %v2019_v29 }
 0x17b   : > { %1794 = vmatprep.subr.bf16.mxu1 %v2046_v54 }
 0x17e   : > { %1795 = vmatpush3.bf16.msra.mxu1 %v2020_v30 }
 0x17f   : > { %1796 = vmatprep.subr.bf16.mxu1 %v2046_v54 }
 0x182   : > { %1797 = vmatpush3.bf16.msra.mxu1 %v2021_v31 }
 0x183   : > { %1802 = vmatprep.subr.bf16.mxu1 %v2046_v54 }
 0x238   : > { %v1758_v32 = vpop.f32.mrb[4].mxu1 }
 0x239   : > { %v1759_v34 = vpop.f32.mrb[5].mxu1 }
 0x23a   : > { %v1760_v35 = vadd.f32 %v1759_v34, %v1758_v32  ;;  %v1761_v36 = vpop.f32.mrb[6].mxu1 }
 0x23b   : > { %v1762_v37 = vpop.f32.mrb[7].mxu1 }
 0x23c   : > { %v1277_v38 = vadd.f32 %v1760_v35, %v1703_v33  ;;  %v1763_v39 = vadd.f32 %v1762_v37, %v1761_v36 }
 0x23e   : > { %v1285_v40 = vmul.f32 0.01, %v1277_v38  ;;  %v1280_v41 = vadd.f32 %v1763_v39, %v1703_v33  ;;  %vm1283_vm5 = vcmp.ge.f32.partialorder %v1277_v38, 0.0 }
 0x240   : > { %vm1284_vm6 = vcmp.ge.f32.partialorder %v1280_v41, 0.0  ;;  %v1286_v42 = vmul.f32 0.01, %v1280_v41  ;;  %v1287_v43 = vsel %vm1283_vm5, %v1277_v38, %v1285_v40 }
 0x242   : > { %v1288_v44 = vsel %vm1284_vm6, %v1280_v41, %v1286_v42 }
 0x243   : > { %v1289_v46 = vpack.c.bf16 %v1288_v44, %v1287_v43 }
 0x245   : > { %1799 = vmatmul.mubr.bf16.vlgmr.msra.gmra.mrb[8].mxu1 %v1289_v46 }
 0x246   : > { %1803 = vmatpush3.bf16.msra.mxu1 %v2022_v45  ;;  %1818 = vmatprep.mubr.msk.bf16.mxu1 %vm2047_vm4, %v2046_v54 }
 0x247   : > { %1804 = vmatprep.subr.bf16.mxu1 %v2046_v54 }
 0x24a   : > { %1805 = vmatpush3.bf16.msra.mxu1 %v2023_v47 }
 0x24b   : > { %1806 = vmatprep.subr.bf16.mxu1 %v2046_v54 }
 0x24e   : > { %1807 = vmatpush3.bf16.msra.mxu1 %v2024_v48 }
 0x24f   : > { %1808 = vmatprep.subr.bf16.mxu1 %v2046_v54 }
 0x252   : > { %1809 = vmatpush3.bf16.msra.mxu1 %v2025_v49 }
 0x253   : > { %1810 = vmatprep.subr.bf16.mxu1 %v2046_v54 }
 0x256   : > { %1811 = vmatpush3.bf16.msra.mxu1 %v2026_v50 }
 0x257   : > { %1812 = vmatprep.subr.bf16.mxu1 %v2046_v54 }
 0x25a   : > { %1813 = vmatpush3.bf16.msra.mxu1 %v2027_v51 }
 0x25b   : > { %1814 = vmatprep.subr.bf16.mxu1 %v2046_v54 }
 0x25e   : > { %1815 = vmatpush3.bf16.msra.mxu1 %v2028_v52 }
 0x25f   : > { %1816 = vmatprep.subr.bf16.mxu1 %v2046_v54 }
 0x262   : > { %1817 = vmatpush3.bf16.msra.mxu1 %v2029_v53 }
 0x318   : > { %v1395_v56 = vpop.f32.mrb[8].mxu1 }
 0x319   : > { %v1396_v57 = vadd.f32 %v1720_v55, %v1395_v56  ;;  %v1800_v58 = vpop.f32.mrb[9].mxu1 }
 0x31a   : > { %v1398_v59 = vpop.f32.mrb[10].mxu1 }
 0x31b   : > { %v1404_v60 = vmul.f32 0.01, %v1396_v57  ;;  %v1399_v61 = vadd.f32 %v1720_v55, %v1398_v59  ;;  %v1801_v62 = vpop.f32.mrb[11].mxu1  ;;  %vm1402_vm7 = vcmp.ge.f32.partialorder %v1396_v57, 0.0 }
 0x31d   : > { %vm1403_vm8 = vcmp.ge.f32.partialorder %v1399_v61, 0.0  ;;  %v1405_v63 = vmul.f32 0.01, %v1399_v61  ;;  %v1406_v54 = vsel %vm1402_vm7, %v1396_v57, %v1404_v60 }
 0x31f   : > { %v1407_v0 = vsel %vm1403_vm8, %v1399_v61, %v1405_v63 }
 0x320   : > { %v1408_v1 = vpack.c.bf16 %v1407_v0, %v1406_v54 }
 0x322   : > { %1819 = vmatmul.mubr.bf16.vlgmr.msra.gmra.mrb[12].mxu1 %v1408_v1 }
 0x3f5   : > { %v1514_v3 = vpop.f32.mrb[12].mxu1 }
 0x3f6   : > { %v1515_v4 = vadd.f32 %v1729_v2, %v1514_v3  ;;  %v1820_v5 = vpop.f32.mrb[13].mxu1 }
 0x3f7   : > { %v1517_v6 = vpop.f32.mrb[14].mxu1 }
 0x3f8   : > { %v1738_v7 = vmul.f32 -1.442695, %v1515_v4  ;;  %v1518_v8 = vadd.f32 %v1729_v2, %v1517_v6  ;;  %v1821_v9 = vpop.f32.mrb[15].mxu1 }
 0x3fa   : > { %2030 = vpow2.f32 %v1738_v7  ;;  %v1739_v10 = vmul.f32 -1.442695, %v1518_v8 }
 0x3fc   : > { %2032 = vpow2.f32 %v1739_v10 }
 0x404   : > { %v2031_v11 = vpop.eup %2030 }
 0x405   : > { %v1527_v12 = vadd.f32 1.0, %v2031_v11 }
 0x406   : > { %v2033_v13 = vpop.eup %2032 }
 0x407   : > { %2034 = vrcp.f32 %v1527_v12  ;;  %v1528_v14 = vadd.f32 1.0, %v2033_v13 }
 0x409   : > { %2036 = vrcp.f32 %v1528_v14 }
 0x411   : > { %v2035_v15 = vpop.eup %2034 }
 0x412   : > { %1534 = vst.msk [vmem:[%s337_s26] sm:$0xff] %vm1533_vm9, %v2035_v15 }
 0x413   : > { %v2037_v16 = vpop.eup %2036 }
 0x414   : > { %1535 = vst.msk [vmem:[%s337_s26 + $0x8] sm:$0xff] %vm1533_vm9, %v2037_v16 }
 0x415 PF: > { %s19_s30 = sadd.s32 1, %s2044_s30  }
 0x416   : > { %p16_p4 = scmp.ge.s32.totalorder %s19_s30, 4  }
 0x418   :  { %18 = sbr.rel (!%p16_p4) target bundleno = 1 (0x1), region = 86 }

</bundles_post_ra>
